<compile_context>
chip_gen: v7x
topology: tpu7x:2x2x1
jax: 0.10.0
libtpu: 0.0.40
codegen_flags: <defaults>
</compile_context>

<pallas_src>
import functools

import jax
import jax.numpy as jnp
from jax.experimental import pallas as pl
from jax.experimental.pallas import tpu as pltpu


def _round_up(x, m):
    return (x + m - 1) // m * m


def _pick_tile(batch):
    """Pick (TB, Bp): batch tile and padded batch.

    Small batches pad only to the sublane multiple (8).  Large batches use up
    to 512 rows per tile but keep >= 2 grid steps so the 'parallel' batch axis
    actually splits across both TensorCores on v7x.
    """
    bp8 = _round_up(batch, 8)
    if bp8 <= 8:
        return bp8, bp8
    tb = min(512, _round_up(pl.cdiv(bp8, 2), 8))
    return tb, _round_up(bp8, tb)


def _resident_spec(shape, index_map):
    """BlockSpec for a block whose index never changes across the grid.

    Single-buffered (saves VMEM + pipeline bookkeeping) when the installed
    Pallas supports pipeline_mode; otherwise falls back to the default.
    """
    try:
        return pl.BlockSpec(shape, index_map, pipeline_mode=pl.Buffered(1))
    except Exception:  # older jax without pipeline_mode / Buffered
        return pl.BlockSpec(shape, index_map)


def refinement_mlp_kernel(rgb_ref, dep_ref,
                          w1_ref, b1_ref,
                          w2_ref, b2_ref,
                          w3_ref, b3_ref,
                          o_ref):
    """Fused: (in-kernel concat) -> Linear+ReLU -> Linear+ReLU -> Linear."""
    # torch.cat([rgb_flat, depth_flat], dim=1) fused as a VMEM lane concat;
    # bf16 cast for the MXU happens here (free on the VPU, kernel is MXU-bound).
    x = jnp.concatenate([rgb_ref[...], dep_ref[...]],
                        axis=-1).astype(jnp.bfloat16)
    # Layer 1 (single K = 2*d_half matmul) + bias + ReLU (f32 epilogue).
    h = jnp.dot(x, w1_ref[...], preferred_element_type=jnp.float32)
    h = jnp.maximum(h + b1_ref[...], 0.0)
    # Layer 2
    h = jnp.dot(h.astype(jnp.bfloat16), w2_ref[...],
                preferred_element_type=jnp.float32)
    h = jnp.maximum(h + b2_ref[...], 0.0)
    # Layer 3 (no activation)
    h = jnp.dot(h.astype(jnp.bfloat16), w3_ref[...],
                preferred_element_type=jnp.float32)
    o_ref[...] = h + b3_ref[...]


def prepare_params(params):
    """One-time weight prep (hoisted out of the per-call forward path).

    PyTorch Linear stores W as (out, in); we keep W^T in bf16 (MXU dtype) and
    biases as (1, out) f32 rows so the kernel does no per-call conversion.
    """
    w1, b1, w2, b2, w3, b3 = params
    return (jnp.transpose(w1).astype(jnp.bfloat16),   # (2*d_half, hidden)
            b1.astype(jnp.float32).reshape(1, -1),
            jnp.transpose(w2).astype(jnp.bfloat16),   # (hidden, hidden)
            b2.astype(jnp.float32).reshape(1, -1),
            jnp.transpose(w3).astype(jnp.bfloat16),   # (hidden, d_out)
            b3.astype(jnp.float32).reshape(1, -1))


@jax.jit
def refinement_mlp_forward(rgb_coords, depth_coords, prepared):
    """rgb_coords, depth_coords: (B, L, 2) f32 -> (B, L, 2) f32."""
    w1t, b1r, w2t, b2r, w3t, b3r = prepared
    B, L, _ = rgb_coords.shape
    d_half = 2 * L
    d_in, hidden = w1t.shape
    d_out = w3t.shape[1]
    assert d_in == 2 * d_half

    rgb_flat = rgb_coords.reshape(B, d_half)
    dep_flat = depth_coords.reshape(B, d_half)

    TB, Bp = _pick_tile(B)
    if Bp != B:
        rgb_flat = jnp.pad(rgb_flat, ((0, Bp - B), (0, 0)))
        dep_flat = jnp.pad(dep_flat, ((0, Bp - B), (0, 0)))

    out = pl.pallas_call(
        refinement_mlp_kernel,
        out_shape=jax.ShapeDtypeStruct((Bp, d_out), jnp.float32),
        grid_spec=pltpu.PrefetchScalarGridSpec(
            num_scalar_prefetch=0,
            grid=(Bp // TB,),
            in_specs=[
                pl.BlockSpec((TB, d_half), lambda i: (i, 0)),   # rgb rows (f32)
                pl.BlockSpec((TB, d_half), lambda i: (i, 0)),   # depth rows (f32)
                _resident_spec((d_in, hidden), lambda i: (0, 0)),   # W1^T
                _resident_spec((1, hidden), lambda i: (0, 0)),      # b1
                _resident_spec((hidden, hidden), lambda i: (0, 0)), # W2^T
                _resident_spec((1, hidden), lambda i: (0, 0)),      # b2
                _resident_spec((hidden, d_out), lambda i: (0, 0)),  # W3^T
                _resident_spec((1, d_out), lambda i: (0, 0)),       # b3
            ],
            out_specs=pl.BlockSpec((TB, d_out), lambda i: (i, 0)),
        ),
        compiler_params=pltpu.CompilerParams(
            dimension_semantics=("parallel",)),  # batch tiles are independent
    )(rgb_flat, dep_flat, w1t, b1r, w2t, b2r, w3t, b3r)

    return out[:B].reshape(B, L, 2)


def init_params(key, num_landmarks, hidden_dim=512):
    """Synthetic init mimicking nn.Linear defaults (U(-1/sqrt(fan_in), +))."""
    input_dim = num_landmarks * 2 * 2
    out_dim = num_landmarks * 2
    dims = [(input_dim, hidden_dim), (hidden_dim, hidden_dim),
            (hidden_dim, out_dim)]
    params = []
    for li, (fan_in, fan_out) in enumerate(dims):
        kw, kb = jax.random.split(jax.random.fold_in(key, li))
        bound = 1.0 / float(fan_in) ** 0.5
        w = jax.random.uniform(kw, (fan_out, fan_in), jnp.float32, -bound, bound)
        b = jax.random.uniform(kb, (fan_out,), jnp.float32, -bound, bound)
        params += [w, b]
    return tuple(params)


def refinement_mlp_ref(rgb_coords, depth_coords, params):
    """Pure-JAX f32 reference matching the PyTorch forward."""
    w1, b1, w2, b2, w3, b3 = params
    B = rgb_coords.shape[0]
    x = jnp.concatenate(
        [rgb_coords.reshape(B, -1), depth_coords.reshape(B, -1)], axis=1)
    h = jnp.maximum(x @ w1.T + b1, 0.0)
    h = jnp.maximum(h @ w2.T + b2, 0.0)
    out = h @ w3.T + b3
    return out.reshape(B, -1, 2)


if __name__ == "__main__":
    key = jax.random.PRNGKey(0)
    k_rgb, k_dep, k_p = jax.random.split(key, 3)

    num_landmarks = 16
    batch = 2

    rgb_coords = jax.random.uniform(k_rgb, (batch, num_landmarks, 2),
                                    jnp.float32)
    depth_coords = jax.random.uniform(k_dep, (batch, num_landmarks, 2),
                                      jnp.float32)
    params = init_params(k_p, num_landmarks)

    prepared = jax.tree_util.tree_map(jax.block_until_ready,
                                      prepare_params(params))

    out = refinement_mlp_forward(rgb_coords, depth_coords, prepared)
    out = jax.block_until_ready(out)

    assert out.shape == (batch, num_landmarks, 2), out.shape
    assert out.dtype == jnp.float32
    assert bool(jnp.all(jnp.isfinite(out)))

    ref = refinement_mlp_ref(rgb_coords, depth_coords, params)
    max_err = float(jnp.max(jnp.abs(out - ref)))
    assert max_err < 5e-2, f"max abs err {max_err}"

    print("KERNEL_OK")
</pallas_src>

<mosaic_0001>
module attributes {stable_mosaic.version = 11 : i64} {
  func.func @refinement_mlp_kernel(%arg0: i32, %arg1: memref<8x32xf32, #tpu.memory_space<vmem>>, %arg2: memref<8x32xf32, #tpu.memory_space<vmem>>, %arg3: memref<64x512xbf16, #tpu.memory_space<vmem>>, %arg4: memref<1x512xf32, #tpu.memory_space<vmem>>, %arg5: memref<512x512xbf16, #tpu.memory_space<vmem>>, %arg6: memref<1x512xf32, #tpu.memory_space<vmem>>, %arg7: memref<512x32xbf16, #tpu.memory_space<vmem>>, %arg8: memref<1x32xf32, #tpu.memory_space<vmem>>, %arg9: memref<8x32xf32, #tpu.memory_space<vmem>>) attributes {dimension_semantics = [#tpu.dimension_semantics<parallel>], iteration_bounds = array<i64: 1>, scalar_prefetch = 0 : i64, scratch_operands = 0 : i64, tpu.core_type = #tpu.core_type<tc>, window_params = [{transform_indices = @transform_0, window_bounds = array<i64: 8, 32>}, {transform_indices = @transform_1, window_bounds = array<i64: 8, 32>}, {pipeline_mode = #tpu.pipeline_mode<synchronous>, transform_indices = @transform_2, window_bounds = array<i64: 64, 512>}, {pipeline_mode = #tpu.pipeline_mode<synchronous>, transform_indices = @transform_3, window_bounds = array<i64: 1, 512>}, {pipeline_mode = #tpu.pipeline_mode<synchronous>, transform_indices = @transform_4, window_bounds = array<i64: 512, 512>}, {pipeline_mode = #tpu.pipeline_mode<synchronous>, transform_indices = @transform_5, window_bounds = array<i64: 1, 512>}, {pipeline_mode = #tpu.pipeline_mode<synchronous>, transform_indices = @transform_6, window_bounds = array<i64: 512, 32>}, {pipeline_mode = #tpu.pipeline_mode<synchronous>, transform_indices = @transform_7, window_bounds = array<i64: 1, 32>}, {transform_indices = @transform_8, window_bounds = array<i64: 8, 32>}]} {
    %c0 = arith.constant 0 : index
    %c0_0 = arith.constant 0 : index
    %0 = vector.load %arg1[%c0, %c0_0] : memref<8x32xf32, #tpu.memory_space<vmem>>, vector<8x32xf32>
    %c0_1 = arith.constant 0 : index
    %c0_2 = arith.constant 0 : index
    %1 = vector.load %arg2[%c0_1, %c0_2] : memref<8x32xf32, #tpu.memory_space<vmem>>, vector<8x32xf32>
    %2 = tpu.concatenate %0, %1 in 1 : vector<8x32xf32>, vector<8x32xf32> -> vector<8x64xf32>
    %3 = arith.truncf %2 : vector<8x64xf32> to vector<8x64xbf16>
    %c0_3 = arith.constant 0 : index
    %c0_4 = arith.constant 0 : index
    %4 = vector.load %arg3[%c0_3, %c0_4] : memref<64x512xbf16, #tpu.memory_space<vmem>>, vector<64x512xbf16>
    %cst = arith.constant dense<0.000000e+00> : vector<8x512xf32>
    %5 = tpu.matmul %3, %4, %cst {dimension_numbers = #tpu.dot_dimension_numbers<[1], [0], [0], [1], [0, 0, 1, 1], [], []>} : vector<8x64xbf16>, vector<64x512xbf16>, vector<8x512xf32> -> vector<8x512xf32>
    %c0_5 = arith.constant 0 : index
    %c0_6 = arith.constant 0 : index
    %6 = vector.load %arg4[%c0_5, %c0_6] : memref<1x512xf32, #tpu.memory_space<vmem>>, vector<1x512xf32>
    %7 = vector.broadcast %6 : vector<1x512xf32> to vector<8x512xf32>
    %8 = arith.addf %5, %7 : vector<8x512xf32>
    %cst_7 = arith.constant 0.000000e+00 : f32
    %9 = vector.broadcast %cst_7 : f32 to vector<8x512xf32>
    %10 = arith.maximumf %8, %9 : vector<8x512xf32>
    %11 = arith.truncf %10 : vector<8x512xf32> to vector<8x512xbf16>
    %c0_8 = arith.constant 0 : index
    %c0_9 = arith.constant 0 : index
    %12 = vector.load %arg5[%c0_8, %c0_9] : memref<512x512xbf16, #tpu.memory_space<vmem>>, vector<512x512xbf16>
    %cst_10 = arith.constant dense<0.000000e+00> : vector<8x512xf32>
    %13 = tpu.matmul %11, %12, %cst_10 {dimension_numbers = #tpu.dot_dimension_numbers<[1], [0], [0], [1], [0, 0, 1, 1], [], []>} : vector<8x512xbf16>, vector<512x512xbf16>, vector<8x512xf32> -> vector<8x512xf32>
    %c0_11 = arith.constant 0 : index
    %c0_12 = arith.constant 0 : index
    %14 = vector.load %arg6[%c0_11, %c0_12] : memref<1x512xf32, #tpu.memory_space<vmem>>, vector<1x512xf32>
    %15 = vector.broadcast %14 : vector<1x512xf32> to vector<8x512xf32>
    %16 = arith.addf %13, %15 : vector<8x512xf32>
    %cst_13 = arith.constant 0.000000e+00 : f32
    %17 = vector.broadcast %cst_13 : f32 to vector<8x512xf32>
    %18 = arith.maximumf %16, %17 : vector<8x512xf32>
    %19 = arith.truncf %18 : vector<8x512xf32> to vector<8x512xbf16>
    %c0_14 = arith.constant 0 : index
    %c0_15 = arith.constant 0 : index
    %20 = vector.load %arg7[%c0_14, %c0_15] : memref<512x32xbf16, #tpu.memory_space<vmem>>, vector<512x32xbf16>
    %cst_16 = arith.constant dense<0.000000e+00> : vector<8x32xf32>
    %21 = tpu.matmul %19, %20, %cst_16 {dimension_numbers = #tpu.dot_dimension_numbers<[1], [0], [0], [1], [0, 0, 1, 1], [], []>} : vector<8x512xbf16>, vector<512x32xbf16>, vector<8x32xf32> -> vector<8x32xf32>
    %c0_17 = arith.constant 0 : index
    %c0_18 = arith.constant 0 : index
    %22 = vector.load %arg8[%c0_17, %c0_18] : memref<1x32xf32, #tpu.memory_space<vmem>>, vector<1x32xf32>
    %23 = vector.broadcast %22 : vector<1x32xf32> to vector<8x32xf32>
    %24 = arith.addf %21, %23 : vector<8x32xf32>
    %c0_19 = arith.constant 0 : index
    %c0_20 = arith.constant 0 : index
    %25 = vector.load %arg9[%c0_19, %c0_20] : memref<8x32xf32, #tpu.memory_space<vmem>>, vector<8x32xf32>
    tpu.vector_store %arg9[%c0_19, %c0_20], %24 {strides = array<i32>} : memref<8x32xf32, #tpu.memory_space<vmem>>, vector<8x32xf32>,
    return
  }
  func.func @transform_0(%arg0: i32) -> (i32, i32) {
    %c0_i32 = arith.constant 0 : i32
    %c0_i32_0 = arith.constant 0 : i32
    return %arg0, %c0_i32 : i32, i32
  }
  func.func @transform_1(%arg0: i32) -> (i32, i32) {
    %c0_i32 = arith.constant 0 : i32
    %c0_i32_0 = arith.constant 0 : i32
    return %arg0, %c0_i32 : i32, i32
  }
  func.func @transform_2(%arg0: i32) -> (i32, i32) {
    %c0_i32 = arith.constant 0 : i32
    %c0_i32_0 = arith.constant 0 : i32
    %c0_i32_1 = arith.constant 0 : i32
    return %c0_i32, %c0_i32_0 : i32, i32
  }
  func.func @transform_3(%arg0: i32) -> (i32, i32) {
    %c0_i32 = arith.constant 0 : i32
    %c0_i32_0 = arith.constant 0 : i32
    %c0_i32_1 = arith.constant 0 : i32
    return %c0_i32, %c0_i32_0 : i32, i32
  }
  func.func @transform_4(%arg0: i32) -> (i32, i32) {
    %c0_i32 = arith.constant 0 : i32
    %c0_i32_0 = arith.constant 0 : i32
    %c0_i32_1 = arith.constant 0 : i32
    return %c0_i32, %c0_i32_0 : i32, i32
  }
  func.func @transform_5(%arg0: i32) -> (i32, i32) {
    %c0_i32 = arith.constant 0 : i32
    %c0_i32_0 = arith.constant 0 : i32
    %c0_i32_1 = arith.constant 0 : i32
    return %c0_i32, %c0_i32_0 : i32, i32
  }
  func.func @transform_6(%arg0: i32) -> (i32, i32) {
    %c0_i32 = arith.constant 0 : i32
    %c0_i32_0 = arith.constant 0 : i32
    %c0_i32_1 = arith.constant 0 : i32
    return %c0_i32, %c0_i32_0 : i32, i32
  }
  func.func @transform_7(%arg0: i32) -> (i32, i32) {
    %c0_i32 = arith.constant 0 : i32
    %c0_i32_0 = arith.constant 0 : i32
    %c0_i32_1 = arith.constant 0 : i32
    return %c0_i32, %c0_i32_0 : i32, i32
  }
  func.func @transform_8(%arg0: i32) -> (i32, i32) {
    %c0_i32 = arith.constant 0 : i32
    %c0_i32_0 = arith.constant 0 : i32
    return %arg0, %c0_i32 : i32, i32
  }
}

</mosaic_0001>

<bundles_post_ra>
// kernel: refinement_mlp_forward.1
= control target key start
LH: loop header
LB: loop body
LE: loop exit
PB: predicated region body
PF: predicated region fallthrough
CT: control target
= control target key end

     0   :  { %13 = vsyncpa [#allocation3], 0  ;;  %s2088_s27 = smov [#allocation2]   ;;  %s2345_s0 = inlined_call_operand.vmem [shape: f32[8,32], index: 0, kind: input, shape index: {}]   ;;  %s2346_s1 = inlined_call_operand.vmem [shape: f32[8,32], index: 1, kind: input, shape index: {}]   ;;  %s2347_s2 = inlined_call_operand.vmem [shape: bf16[64,512], index: 2, kind: input, shape index: {}]   ;;  %s2348_s3 = inlined_call_operand.vmem [shape: f32[1,512], index: 3, kind: input, shape index: {}]   ;;  %s2349_s4 = inlined_call_operand.hbm [shape: bf16[512,512], index: 4, kind: input, shape index: {}]   ;;  %s2350_s5 = inlined_call_operand.vmem [shape: f32[1,512], index: 5, kind: input, shape index: {}]   ;;  %s2351_s6 = inlined_call_operand.vmem [shape: bf16[512,32], index: 6, kind: input, shape index: {}]   ;;  %s2352_s7 = inlined_call_operand.vmem [shape: f32[1,32], index: 7, kind: input, shape index: {}]   ;;  %s2353_s8 = inlined_call_operand.vmem [shape: f32[8,32], index: 8, kind: output, shape index: {}]  }
   0x1   :  { %s27_s28 = sshll.u32 %s2088_s27, 4  ;;  %s2064_s9 = scalar_lea.hbm %s2349_s4, 16384  ;;  %s28_s28 = int_to_ptr.vmem [resolvable:$true] %s27_s28 }
   0x2   :  { %p2065_p0 = scmp.ne.s32.totalorder %s2349_s4, %s2064_s9  ;;  %p2068_p1 = scmp.lt.u32.totalorder %s2064_s9, %s2349_s4 }
   0x4   :  { %p2070_p2 = pnand %p2068_p1, %p2065_p0 }
   0x6   :  { %2073 = shalt.err (!%p2070_p2)
}
   0x7   :  { %s2074_s14 = scalar_lea.vmem %s28_s28, 16384  ;;  %p2079_p4 = scmp.lt.s32.totalorder %s28_s28, %s28_s28 }
   0x8   :  { %p2075_p3 = scmp.ne.s32.totalorder %s28_s28, %s2074_s14  ;;  %p2080_p5 = scmp.lt.s32.totalorder %s2074_s14, %s2074_s14 }
   0xa   :  { %p2081_p6 = por %p2080_p5, %p2079_p4 }
   0xc   :  { %p2082_p7 = pnand %p2081_p6, %p2075_p3 }
   0xe   :  { %2085 = shalt.err (!%p2082_p7)
}
   0xf   :  { %s2089_s15 = smov 256   ;;  %s2090_s16 = smov 16  }
  0x10   :  { %33 = dma.hbm_to_vmem [thread:$0]  %s2349_s4, 16384, %s28_s28, [#allocation3], %s2089_s15, %s2089_s15, %s2090_s16  }
  0x11   :  { %2086 = dma.done.wait [#allocation3], 16384  }
  0x12   :  { %2087 = vsyncadd [#allocation3], 4294950912  ;;  %v2091_v0 = vmov 0   ;;  %v45_v1 = vld [vmem:[%s2346_s1] sm:$0xff]  ;;  %s2092_s21 = smov 32   ;;  %vm50_vm0 = vcmask 261120  }
  0x13   :  { %207 = vmatprep.mubr.bf16.mxu0 %v2091_v0  ;;  %248 = vmatprep.mubr.bf16.mxu1 %v2091_v0  ;;  %v1816_v2 = vld [vmem:[%s2347_s2 + $0x4] ss:$16 sps:$4 sm:$0xff]   ;;  %v1818_v3 = vld [vmem:[%s2347_s2 + $0xc] ss:$16 sps:$4 sm:$0xff]   ;;  %v1820_v4 = vld [vmem:[%s2347_s2] ss:$16 sps:$4 sm:$0xff]  }
  0x14   :  { %47 = vrot.lane.b32.xlu0 %v45_v1, %s2092_s21  ;;  %v1821_v5 = vld [vmem:[%s2347_s2 + $0x8] ss:$16 sps:$4 sm:$0xff]   ;;  %175 = vmatprep.subr.bf16.mxu0 %v1816_v2  ;;  %v1822_v6 = vld [vmem:[%s2347_s2 + $0x24] ss:$16 sps:$4 sm:$0xff]   ;;  %v1824_v7 = vld [vmem:[%s2347_s2 + $0x2c] ss:$16 sps:$4 sm:$0xff]  }
  0x15   :  { %216 = vmatprep.subr.bf16.mxu1 %v1818_v3  ;;  %176 = vmatpush1.bf16.msra.mxu0 %v1820_v4  ;;  %v1826_v8 = vld [vmem:[%s2347_s2 + $0x20] ss:$16 sps:$4 sm:$0xff]   ;;  %v1827_v9 = vld [vmem:[%s2347_s2 + $0x28] ss:$16 sps:$4 sm:$0xff]   ;;  %v1828_v10 = vld [vmem:[%s2347_s2 + $0x44] ss:$16 sps:$4 sm:$0xff]  }
  0x16   :  { %217 = vmatpush1.bf16.msra.mxu1 %v1821_v5  ;;  %177 = vmatprep.subr.bf16.mxu0 %v1822_v6  ;;  %v1830_v11 = vld [vmem:[%s2347_s2 + $0x4c] ss:$16 sps:$4 sm:$0xff]   ;;  %v1832_v12 = vld [vmem:[%s2347_s2 + $0x40] ss:$16 sps:$4 sm:$0xff]   ;;  %v1833_v13 = vld [vmem:[%s2347_s2 + $0x48] ss:$16 sps:$4 sm:$0xff]  }
  0x17   :  { %218 = vmatprep.subr.bf16.mxu1 %v1824_v7  ;;  %v1834_v14 = vld [vmem:[%s2347_s2 + $0x64] ss:$16 sps:$4 sm:$0xff]   ;;  %v1836_v15 = vld [vmem:[%s2347_s2 + $0x6c] ss:$16 sps:$4 sm:$0xff]   ;;  %v1838_v16 = vld [vmem:[%s2347_s2 + $0x60] ss:$16 sps:$4 sm:$0xff]  }
  0x18   :  { %v1839_v17 = vld [vmem:[%s2347_s2 + $0x68] ss:$16 sps:$4 sm:$0xff]   ;;  %v1842_v18 = vld [vmem:[#allocation2 + $0x4] ss:$16 sps:$4 sm:$0xff]   ;;  %v1845_v19 = vld [vmem:[#allocation2 + $0xc] ss:$16 sps:$4 sm:$0xff]  }
  0x19   :  { %178 = vmatpush1.bf16.msra.mxu0 %v1826_v8  ;;  %v44_v20 = vld [vmem:[%s2345_s0] sm:$0xff]  ;;  %vm171_vm1 = vcmask 523264   ;;  %v1843_v24 = vld [vmem:[#allocation2 + $0x8] ss:$16 sps:$4 sm:$0xff]   ;;  %v1851_v27 = vld [vmem:[#allocation2 + $0x2c] ss:$16 sps:$4 sm:$0xff]  }
  0x1a   :  { %219 = vmatpush1.bf16.msra.mxu1 %v1827_v9  ;;  %179 = vmatprep.subr.bf16.mxu0 %v1828_v10  ;;  %v1840_v23 = vld [vmem:[#allocation2] ss:$16 sps:$4 sm:$0xff]   ;;  %v1848_v26 = vld [vmem:[#allocation2 + $0x24] ss:$16 sps:$4 sm:$0xff]   ;;  %v1849_v29 = vld [vmem:[#allocation2 + $0x28] ss:$16 sps:$4 sm:$0xff]  }
  0x1b   :  { %220 = vmatprep.subr.bf16.mxu1 %v1830_v11  ;;  %v1846_v28 = vld [vmem:[#allocation2 + $0x20] ss:$16 sps:$4 sm:$0xff]   ;;  %v1854_v30 = vld [vmem:[#allocation2 + $0x44] ss:$16 sps:$4 sm:$0xff]   ;;  %v1857_v31 = vld [vmem:[#allocation2 + $0x4c] ss:$16 sps:$4 sm:$0xff]  }
  0x1c   :  { %v1852_v32 = vld [vmem:[#allocation2 + $0x40] ss:$16 sps:$4 sm:$0xff]   ;;  %v1855_v33 = vld [vmem:[#allocation2 + $0x48] ss:$16 sps:$4 sm:$0xff]   ;;  %v1860_v34 = vld [vmem:[#allocation2 + $0x64] ss:$16 sps:$4 sm:$0xff]  }
  0x1d   :  { %180 = vmatpush1.bf16.msra.mxu0 %v1832_v12  ;;  %v1863_v35 = vld [vmem:[#allocation2 + $0x6c] ss:$16 sps:$4 sm:$0xff]   ;;  %v1858_v36 = vld [vmem:[#allocation2 + $0x60] ss:$16 sps:$4 sm:$0xff]   ;;  %v1861_v37 = vld [vmem:[#allocation2 + $0x68] ss:$16 sps:$4 sm:$0xff]  }
  0x1e   :  { %221 = vmatpush1.bf16.msra.mxu1 %v1833_v13  ;;  %181 = vmatprep.subr.bf16.mxu0 %v1834_v14  ;;  %v1866_v38 = vld [vmem:[#allocation2 + $0x84] ss:$16 sps:$4 sm:$0xff]   ;;  %v1869_v39 = vld [vmem:[#allocation2 + $0x8c] ss:$16 sps:$4 sm:$0xff]   ;;  %v1864_v40 = vld [vmem:[#allocation2 + $0x80] ss:$16 sps:$4 sm:$0xff]  }
  0x1f   :  { %222 = vmatprep.subr.bf16.mxu1 %v1836_v15  ;;  %v1867_v41 = vld [vmem:[#allocation2 + $0x88] ss:$16 sps:$4 sm:$0xff]   ;;  %v1872_v42 = vld [vmem:[#allocation2 + $0xa4] ss:$16 sps:$4 sm:$0xff]   ;;  %v1875_v43 = vld [vmem:[#allocation2 + $0xac] ss:$16 sps:$4 sm:$0xff]  }
  0x20   :  { %v1870_v44 = vld [vmem:[#allocation2 + $0xa0] ss:$16 sps:$4 sm:$0xff]   ;;  %v1873_v45 = vld [vmem:[#allocation2 + $0xa8] ss:$16 sps:$4 sm:$0xff]   ;;  %v1878_v46 = vld [vmem:[#allocation2 + $0xc4] ss:$16 sps:$4 sm:$0xff]  }
  0x21   :  { %182 = vmatpush1.bf16.msra.mxu0 %v1838_v16  ;;  %v1881_v47 = vld [vmem:[#allocation2 + $0xcc] ss:$16 sps:$4 sm:$0xff]   ;;  %v1876_v48 = vld [vmem:[#allocation2 + $0xc0] ss:$16 sps:$4 sm:$0xff]   ;;  %v1879_v49 = vld [vmem:[#allocation2 + $0xc8] ss:$16 sps:$4 sm:$0xff]  }
  0x22   :  { %223 = vmatpush1.bf16.msra.mxu1 %v1839_v17  ;;  %1055 = vmatprep.subr.bf16.mxu0 %v1842_v18  ;;  %v1884_v50 = vld [vmem:[#allocation2 + $0xe4] ss:$16 sps:$4 sm:$0xff]   ;;  %v1887_v51 = vld [vmem:[#allocation2 + $0xec] ss:$16 sps:$4 sm:$0xff]   ;;  %v1882_v52 = vld [vmem:[#allocation2 + $0xe0] ss:$16 sps:$4 sm:$0xff]  }
  0x23   :  { %1137 = vmatprep.subr.bf16.mxu1 %v1845_v19  ;;  %v1885_v53 = vld [vmem:[#allocation2 + $0xe8] ss:$16 sps:$4 sm:$0xff]   ;;  %v1890_v54 = vld [vmem:[#allocation2 + $0x104] ss:$16 sps:$4 sm:$0xff]   ;;  %v1893_v55 = vld [vmem:[#allocation2 + $0x10c] ss:$16 sps:$4 sm:$0xff]  }
  0x24   :  { %v1888_v56 = vld [vmem:[#allocation2 + $0x100] ss:$16 sps:$4 sm:$0xff]   ;;  %v1891_v57 = vld [vmem:[#allocation2 + $0x108] ss:$16 sps:$4 sm:$0xff]   ;;  %v1896_v58 = vld [vmem:[#allocation2 + $0x124] ss:$16 sps:$4 sm:$0xff]  }
  0x25   :  { %v1899_v59 = vld [vmem:[#allocation2 + $0x12c] ss:$16 sps:$4 sm:$0xff]   ;;  %v1894_v60 = vld [vmem:[#allocation2 + $0x120] ss:$16 sps:$4 sm:$0xff]   ;;  %v1897_v61 = vld [vmem:[#allocation2 + $0x128] ss:$16 sps:$4 sm:$0xff]  }
  0x26   :  { %v1902_v62 = vld [vmem:[#allocation2 + $0x144] ss:$16 sps:$4 sm:$0xff]   ;;  %v1905_v63 = vld [vmem:[#allocation2 + $0x14c] ss:$16 sps:$4 sm:$0xff]   ;;  %v1900_v0 = vld [vmem:[#allocation2 + $0x140] ss:$16 sps:$4 sm:$0xff]  }
  0x27   :  { %v1903_v1 = vld [vmem:[#allocation2 + $0x148] ss:$16 sps:$4 sm:$0xff]   ;;  %v1908_v2 = vld [vmem:[#allocation2 + $0x164] ss:$16 sps:$4 sm:$0xff]   ;;  %v1911_v3 = vld [vmem:[#allocation2 + $0x16c] ss:$16 sps:$4 sm:$0xff]  }
  0x28   :  { %v1906_v4 = vld [vmem:[#allocation2 + $0x160] ss:$16 sps:$4 sm:$0xff]   ;;  %v1909_v5 = vld [vmem:[#allocation2 + $0x168] ss:$16 sps:$4 sm:$0xff]   ;;  %v1914_v6 = vld [vmem:[#allocation2 + $0x184] ss:$16 sps:$4 sm:$0xff]  }
  0x29   :  { %v1917_v7 = vld [vmem:[#allocation2 + $0x18c] ss:$16 sps:$4 sm:$0xff]   ;;  %v1912_v8 = vld [vmem:[#allocation2 + $0x180] ss:$16 sps:$4 sm:$0xff]   ;;  %v1915_v9 = vld [vmem:[#allocation2 + $0x188] ss:$16 sps:$4 sm:$0xff]  }
  0x2a   :  { %v1920_v10 = vld [vmem:[#allocation2 + $0x1a4] ss:$16 sps:$4 sm:$0xff]   ;;  %v1923_v11 = vld [vmem:[#allocation2 + $0x1ac] ss:$16 sps:$4 sm:$0xff]   ;;  %v1918_v12 = vld [vmem:[#allocation2 + $0x1a0] ss:$16 sps:$4 sm:$0xff]  }
  0x2b   :  { %v1921_v13 = vld [vmem:[#allocation2 + $0x1a8] ss:$16 sps:$4 sm:$0xff]   ;;  %v1926_v14 = vld [vmem:[#allocation2 + $0x1c4] ss:$16 sps:$4 sm:$0xff]   ;;  %v1929_v15 = vld [vmem:[#allocation2 + $0x1cc] ss:$16 sps:$4 sm:$0xff]  }
  0x2c   :  { %v1924_v16 = vld [vmem:[#allocation2 + $0x1c0] ss:$16 sps:$4 sm:$0xff]   ;;  %v1927_v17 = vld [vmem:[#allocation2 + $0x1c8] ss:$16 sps:$4 sm:$0xff]   ;;  %v1932_v18 = vld [vmem:[#allocation2 + $0x1e4] ss:$16 sps:$4 sm:$0xff]  }
  0x2d   :  { %v1935_v19 = vld [vmem:[#allocation2 + $0x1ec] ss:$16 sps:$4 sm:$0xff]  }
  0x86   :  { %v48_v21 = vpop.permute.xlu0 %47 }
  0x87   :  { %v51_v22 = vsel %vm50_vm0, %v44_v20, %v48_v21  ;;  %v1930_v20 = vld [vmem:[#allocation2 + $0x1e0] ss:$16 sps:$4 sm:$0xff]   ;;  %v1933_v21 = vld [vmem:[#allocation2 + $0x1e8] ss:$16 sps:$4 sm:$0xff]  }
  0x88   :  { %v52_v25 = vpack.c.bf16 %v51_v22, %v51_v22  ;;  %v1938_v22 = vld [vmem:[#allocation2 + $0x204] ss:$16 sps:$4 sm:$0xff]  }
  0x8a   :  { %1592 = vmatmul.mubr.msk.bf16.vlgmr.msra.gmra.mrb[0].mxu0 %vm171_vm1, %v52_v25  ;;  %1593 = vmatmul.mubr.msk.bf16.vlgmr.msra.gmra.mrb[0].mxu1 %vm171_vm1, %v52_v25 }
  0x8b   :  { %1056 = vmatpush1.bf16.msra.mxu0 %v1840_v23  ;;  %1138 = vmatpush1.bf16.msra.mxu1 %v1843_v24  ;;  %v1941_v23 = vld [vmem:[#allocation2 + $0x20c] ss:$16 sps:$4 sm:$0xff]   ;;  %v71_v24 = vlaneseq }
  0x8c   :  { %1057 = vmatprep.subr.bf16.mxu0 %v1848_v26  ;;  %1139 = vmatprep.subr.bf16.mxu1 %v1851_v27  ;;  %v2211_v27 = vld [vmem:[%s2348_s3] sm:$0xf] }
  0x8d   :  { %v2205_v25 = vshrl.u32 %v71_v24, 7  ;;  %v1998_v24 = vld [vmem:[#allocation2 + $0x344] ss:$16 sps:$4 sm:$0xff]  }
  0x8f   :  { %1058 = vmatpush1.bf16.msra.mxu0 %v1846_v28  ;;  %1140 = vmatpush1.bf16.msra.mxu1 %v1849_v29  ;;  %v73_v26 = vsub.s32 0, %v2205_v25  ;;  %v77_v28 = vsub.s32 1, %v2205_v25  ;;  %v85_v29 = vsub.s32 3, %v2205_v25 }
  0x90   :  { %1059 = vmatprep.subr.bf16.mxu0 %v1854_v30  ;;  %1141 = vmatprep.subr.bf16.mxu1 %v1857_v31 }
  0x91   :  { %v74_v30 = vrot.slane %v2211_v27, %v73_v26  ;;  %v78_v31 = vrot.slane %v2211_v27, %v77_v28 }
  0x93   :  { %1060 = vmatpush1.bf16.msra.mxu0 %v1852_v32  ;;  %1142 = vmatpush1.bf16.msra.mxu1 %v1855_v33  ;;  %v86_v32 = vrot.slane %v2211_v27, %v85_v29 }
  0x94   :  { %1061 = vmatprep.subr.bf16.mxu0 %v1860_v34  ;;  %1143 = vmatprep.subr.bf16.mxu1 %v1863_v35 }
  0x97   :  { %1062 = vmatpush1.bf16.msra.mxu0 %v1858_v36  ;;  %1144 = vmatpush1.bf16.msra.mxu1 %v1861_v37 }
  0x98   :  { %1063 = vmatprep.subr.bf16.mxu0 %v1866_v38  ;;  %1145 = vmatprep.subr.bf16.mxu1 %v1869_v39 }
  0x9b   :  { %1064 = vmatpush1.bf16.msra.mxu0 %v1864_v40  ;;  %1146 = vmatpush1.bf16.msra.mxu1 %v1867_v41 }
  0x9c   :  { %1065 = vmatprep.subr.bf16.mxu0 %v1872_v42  ;;  %1147 = vmatprep.subr.bf16.mxu1 %v1875_v43 }
  0x9f   :  { %1066 = vmatpush1.bf16.msra.mxu0 %v1870_v44  ;;  %1148 = vmatpush1.bf16.msra.mxu1 %v1873_v45 }
  0xa0   :  { %1067 = vmatprep.subr.bf16.mxu0 %v1878_v46  ;;  %1149 = vmatprep.subr.bf16.mxu1 %v1881_v47 }
  0xa3   :  { %1068 = vmatpush1.bf16.msra.mxu0 %v1876_v48  ;;  %1150 = vmatpush1.bf16.msra.mxu1 %v1879_v49  ;;  %v1936_v48 = vld [vmem:[#allocation2 + $0x200] ss:$16 sps:$4 sm:$0xff]   ;;  %v1939_v49 = vld [vmem:[#allocation2 + $0x208] ss:$16 sps:$4 sm:$0xff]  }
  0xa4   :  { %1069 = vmatprep.subr.bf16.mxu0 %v1884_v50  ;;  %1151 = vmatprep.subr.bf16.mxu1 %v1887_v51  ;;  %v1944_v51 = vld [vmem:[#allocation2 + $0x224] ss:$16 sps:$4 sm:$0xff]  }
  0xa7   :  { %1070 = vmatpush1.bf16.msra.mxu0 %v1882_v52  ;;  %1152 = vmatpush1.bf16.msra.mxu1 %v1885_v53  ;;  %v1947_v52 = vld [vmem:[#allocation2 + $0x22c] ss:$16 sps:$4 sm:$0xff]  }
  0xa8   :  { %1071 = vmatprep.subr.bf16.mxu0 %v1890_v54  ;;  %1153 = vmatprep.subr.bf16.mxu1 %v1893_v55  ;;  %v1942_v54 = vld [vmem:[#allocation2 + $0x220] ss:$16 sps:$4 sm:$0xff]   ;;  %v1945_v55 = vld [vmem:[#allocation2 + $0x228] ss:$16 sps:$4 sm:$0xff]  }
  0xab   :  { %1072 = vmatpush1.bf16.msra.mxu0 %v1888_v56  ;;  %1154 = vmatpush1.bf16.msra.mxu1 %v1891_v57  ;;  %v1950_v56 = vld [vmem:[#allocation2 + $0x244] ss:$16 sps:$4 sm:$0xff]   ;;  %v1953_v57 = vld [vmem:[#allocation2 + $0x24c] ss:$16 sps:$4 sm:$0xff]  }
  0xac   :  { %1073 = vmatprep.subr.bf16.mxu0 %v1896_v58  ;;  %1155 = vmatprep.subr.bf16.mxu1 %v1899_v59  ;;  %v1948_v58 = vld [vmem:[#allocation2 + $0x240] ss:$16 sps:$4 sm:$0xff]   ;;  %v1951_v59 = vld [vmem:[#allocation2 + $0x248] ss:$16 sps:$4 sm:$0xff]  }
  0xaf   :  { %1074 = vmatpush1.bf16.msra.mxu0 %v1894_v60  ;;  %1156 = vmatpush1.bf16.msra.mxu1 %v1897_v61  ;;  %v1956_v60 = vld [vmem:[#allocation2 + $0x264] ss:$16 sps:$4 sm:$0xff]   ;;  %v1959_v61 = vld [vmem:[#allocation2 + $0x26c] ss:$16 sps:$4 sm:$0xff]  }
  0xb0   :  { %1075 = vmatprep.subr.bf16.mxu0 %v1902_v62  ;;  %1157 = vmatprep.subr.bf16.mxu1 %v1905_v63  ;;  %v1954_v62 = vld [vmem:[#allocation2 + $0x260] ss:$16 sps:$4 sm:$0xff]   ;;  %v1957_v63 = vld [vmem:[#allocation2 + $0x268] ss:$16 sps:$4 sm:$0xff]  }
  0xb3   :  { %1076 = vmatpush1.bf16.msra.mxu0 %v1900_v0  ;;  %1158 = vmatpush1.bf16.msra.mxu1 %v1903_v1  ;;  %v1962_v0 = vld [vmem:[#allocation2 + $0x284] ss:$16 sps:$4 sm:$0xff]   ;;  %v1965_v1 = vld [vmem:[#allocation2 + $0x28c] ss:$16 sps:$4 sm:$0xff]  }
  0xb4   :  { %1077 = vmatprep.subr.bf16.mxu0 %v1908_v2  ;;  %1159 = vmatprep.subr.bf16.mxu1 %v1911_v3  ;;  %v1960_v2 = vld [vmem:[#allocation2 + $0x280] ss:$16 sps:$4 sm:$0xff]   ;;  %v1963_v3 = vld [vmem:[#allocation2 + $0x288] ss:$16 sps:$4 sm:$0xff]  }
  0xb7   :  { %1078 = vmatpush1.bf16.msra.mxu0 %v1906_v4  ;;  %1160 = vmatpush1.bf16.msra.mxu1 %v1909_v5  ;;  %v1968_v4 = vld [vmem:[#allocation2 + $0x2a4] ss:$16 sps:$4 sm:$0xff]   ;;  %v1971_v5 = vld [vmem:[#allocation2 + $0x2ac] ss:$16 sps:$4 sm:$0xff]  }
  0xb8   :  { %1079 = vmatprep.subr.bf16.mxu0 %v1914_v6  ;;  %1161 = vmatprep.subr.bf16.mxu1 %v1917_v7  ;;  %v1966_v6 = vld [vmem:[#allocation2 + $0x2a0] ss:$16 sps:$4 sm:$0xff]   ;;  %v1969_v7 = vld [vmem:[#allocation2 + $0x2a8] ss:$16 sps:$4 sm:$0xff]  }
  0xbb   :  { %1080 = vmatpush1.bf16.msra.mxu0 %v1912_v8  ;;  %1162 = vmatpush1.bf16.msra.mxu1 %v1915_v9  ;;  %v1974_v8 = vld [vmem:[#allocation2 + $0x2c4] ss:$16 sps:$4 sm:$0xff]   ;;  %v1977_v9 = vld [vmem:[#allocation2 + $0x2cc] ss:$16 sps:$4 sm:$0xff]  }
  0xbc   :  { %1081 = vmatprep.subr.bf16.mxu0 %v1920_v10  ;;  %1163 = vmatprep.subr.bf16.mxu1 %v1923_v11  ;;  %v1972_v10 = vld [vmem:[#allocation2 + $0x2c0] ss:$16 sps:$4 sm:$0xff]   ;;  %v1975_v11 = vld [vmem:[#allocation2 + $0x2c8] ss:$16 sps:$4 sm:$0xff]  }
  0xbf   :  { %1082 = vmatpush1.bf16.msra.mxu0 %v1918_v12  ;;  %1164 = vmatpush1.bf16.msra.mxu1 %v1921_v13  ;;  %v1980_v12 = vld [vmem:[#allocation2 + $0x2e4] ss:$16 sps:$4 sm:$0xff]   ;;  %v1983_v13 = vld [vmem:[#allocation2 + $0x2ec] ss:$16 sps:$4 sm:$0xff]  }
  0xc0   :  { %1083 = vmatprep.subr.bf16.mxu0 %v1926_v14  ;;  %1165 = vmatprep.subr.bf16.mxu1 %v1929_v15  ;;  %v1978_v14 = vld [vmem:[#allocation2 + $0x2e0] ss:$16 sps:$4 sm:$0xff]   ;;  %v1981_v15 = vld [vmem:[#allocation2 + $0x2e8] ss:$16 sps:$4 sm:$0xff]  }
  0xc3   :  { %1084 = vmatpush1.bf16.msra.mxu0 %v1924_v16  ;;  %1166 = vmatpush1.bf16.msra.mxu1 %v1927_v17  ;;  %v1986_v16 = vld [vmem:[#allocation2 + $0x304] ss:$16 sps:$4 sm:$0xff]   ;;  %v1989_v17 = vld [vmem:[#allocation2 + $0x30c] ss:$16 sps:$4 sm:$0xff]  }
  0xc4   :  { %1085 = vmatprep.subr.bf16.mxu0 %v1932_v18  ;;  %1167 = vmatprep.subr.bf16.mxu1 %v1935_v19  ;;  %v1984_v18 = vld [vmem:[#allocation2 + $0x300] ss:$16 sps:$4 sm:$0xff]   ;;  %v1987_v19 = vld [vmem:[#allocation2 + $0x308] ss:$16 sps:$4 sm:$0xff]  }
  0xc7   :  { %1086 = vmatpush1.bf16.msra.mxu0 %v1930_v20  ;;  %1168 = vmatpush1.bf16.msra.mxu1 %v1933_v21  ;;  %v1992_v20 = vld [vmem:[#allocation2 + $0x324] ss:$16 sps:$4 sm:$0xff]   ;;  %v1995_v21 = vld [vmem:[#allocation2 + $0x32c] ss:$16 sps:$4 sm:$0xff]  }
  0xc8   :  { %1096 = vmatprep.subr.bf16.mxu0 %v1938_v22  ;;  %1178 = vmatprep.subr.bf16.mxu1 %v1941_v23  ;;  %v1990_v22 = vld [vmem:[#allocation2 + $0x320] ss:$16 sps:$4 sm:$0xff]   ;;  %v1993_v23 = vld [vmem:[#allocation2 + $0x328] ss:$16 sps:$4 sm:$0xff]  }
 0x15d   :  { %v209_v33 = vpop.f32.mrb[0].mxu0  ;;  %v2224_v34 = vpop.f32.mrb[0].mxu1 }
 0x15e   :  { %v210_v35 = vadd.f32 %v209_v33, %v74_v30  ;;  %v211_v36 = vpop.f32.mrb[1].mxu0  ;;  %v252_v37 = vpop.f32.mrb[1].mxu1  ;;  %v2001_v30 = vld [vmem:[#allocation2 + $0x34c] ss:$16 sps:$4 sm:$0xff]   ;;  %v2004_v33 = vld [vmem:[#allocation2 + $0x364] ss:$16 sps:$4 sm:$0xff]  }
 0x15f   :  { %v212_v38 = vadd.f32 %v211_v36, %v78_v31  ;;  %v253_v39 = vadd.f32 %v252_v37, %v86_v32  ;;  %v213_v40 = vpop.f32.mrb[2].mxu0  ;;  %v254_v41 = vpop.f32.mrb[2].mxu1  ;;  %v1996_v31 = vld [vmem:[#allocation2 + $0x340] ss:$16 sps:$4 sm:$0xff]   ;;  %v1999_v32 = vld [vmem:[#allocation2 + $0x348] ss:$16 sps:$4 sm:$0xff]  }
 0x160   :  { %v257_v42 = vmax.f32 %v210_v35, 0.0  ;;  %v214_v43 = vpop.f32.mrb[3].mxu0  ;;  %v255_v44 = vpop.f32.mrb[3].mxu1  ;;  %v2007_v35 = vld [vmem:[#allocation2 + $0x36c] ss:$16 sps:$4 sm:$0xff]  }
 0x161   :  { %v258_v45 = vmax.f32 %v212_v38, 0.0  ;;  %v260_v46 = vmax.f32 %v253_v39, 0.0  ;;  %v2002_v36 = vld [vmem:[#allocation2 + $0x360] ss:$16 sps:$4 sm:$0xff]   ;;  %v2005_v37 = vld [vmem:[#allocation2 + $0x368] ss:$16 sps:$4 sm:$0xff]  }
 0x162   :  { %v261_v50 = vpack.c.bf16 %v257_v42, %v257_v42  ;;  %v2010_v38 = vld [vmem:[#allocation2 + $0x384] ss:$16 sps:$4 sm:$0xff]   ;;  %v2013_v39 = vld [vmem:[#allocation2 + $0x38c] ss:$16 sps:$4 sm:$0xff]   ;;  %v2008_v40 = vld [vmem:[#allocation2 + $0x380] ss:$16 sps:$4 sm:$0xff]  }
 0x163   :  { %v262_v47 = vpack.c.bf16 %v258_v45, %v258_v45  ;;  %v264_v53 = vpack.c.bf16 %v260_v46, %v260_v46  ;;  %v2011_v41 = vld [vmem:[#allocation2 + $0x388] ss:$16 sps:$4 sm:$0xff]   ;;  %v81_v42 = vsub.s32 2, %v2205_v25  ;;  %v2016_v43 = vld [vmem:[#allocation2 + $0x3a4] ss:$16 sps:$4 sm:$0xff]  }
 0x164   :  { %v2019_v44 = vld [vmem:[#allocation2 + $0x3ac] ss:$16 sps:$4 sm:$0xff]   ;;  %v2014_v45 = vld [vmem:[#allocation2 + $0x3a0] ss:$16 sps:$4 sm:$0xff]   ;;  %v2017_v46 = vld [vmem:[#allocation2 + $0x3a8] ss:$16 sps:$4 sm:$0xff]  }
 0x165   :  { %1087 = vmatprep.mubr.bf16.mxu0 %v262_v47  ;;  %1169 = vmatprep.mubr.bf16.mxu1 %v262_v47  ;;  %v82_v47 = vrot.slane %v2211_v27, %v81_v42  ;;  %v2032_v27 = vld [vmem:[%s2351_s6 + $0x40] sm:$0xff]  }
 0x166   :  { %1088 = vmatmul.mubr.bf16.vlgmr.msra.gmra.mrb[4].mxu0 %v261_v50  ;;  %1170 = vmatmul.mubr.bf16.vlgmr.msra.gmra.mrb[4].mxu1 %v261_v50  ;;  %v2020_v50 = vld [vmem:[#allocation2 + $0x3c0] ss:$16 sps:$4 sm:$0xff]  }
 0x167   :  { %1097 = vmatpush1.bf16.msra.mxu0 %v1936_v48  ;;  %1179 = vmatpush1.bf16.msra.mxu1 %v1939_v49  ;;  %v2022_v48 = vld [vmem:[#allocation2 + $0x3c4] ss:$16 sps:$4 sm:$0xff]   ;;  %v2025_v49 = vld [vmem:[#allocation2 + $0x3cc] ss:$16 sps:$4 sm:$0xff]  }
 0x168   :  { %1128 = vmatprep.mubr.bf16.mxu0 %v264_v53  ;;  %1210 = vmatprep.mubr.bf16.mxu1 %v264_v53  ;;  %v2028_v53 = vld [vmem:[#allocation2 + $0x3e4] ss:$16 sps:$4 sm:$0xff]  }
 0x169   :  { %1098 = vmatprep.subr.bf16.mxu0 %v1944_v51  ;;  %1180 = vmatprep.subr.bf16.mxu1 %v1947_v52  ;;  %v2023_v51 = vld [vmem:[#allocation2 + $0x3c8] ss:$16 sps:$4 sm:$0xff]   ;;  %v251_v52 = vadd.f32 %v2224_v34, %v82_v47  ;;  %v2034_v34 = vld [vmem:[%s2351_s6] sm:$0xff]  }
 0x16b   :  { %1099 = vmatpush1.bf16.msra.mxu0 %v1942_v54  ;;  %1181 = vmatpush1.bf16.msra.mxu1 %v1945_v55  ;;  %v2031_v54 = vld [vmem:[#allocation2 + $0x3ec] ss:$16 sps:$4 sm:$0xff]   ;;  %v2026_v55 = vld [vmem:[#allocation2 + $0x3e0] ss:$16 sps:$4 sm:$0xff]  }
 0x16c   :  { %1100 = vmatprep.subr.bf16.mxu0 %v1950_v56  ;;  %1182 = vmatprep.subr.bf16.mxu1 %v1953_v57  ;;  %v2029_v56 = vld [vmem:[#allocation2 + $0x3e8] ss:$16 sps:$4 sm:$0xff]   ;;  %v259_v57 = vmax.f32 %v251_v52, 0.0 }
 0x16f   :  { %1101 = vmatpush1.bf16.msra.mxu0 %v1948_v58  ;;  %1183 = vmatpush1.bf16.msra.mxu1 %v1951_v59  ;;  %v2033_v58 = vld [vmem:[%s2351_s6 + $0xc0] sm:$0xff]  }
 0x170   :  { %1102 = vmatprep.subr.bf16.mxu0 %v1956_v60  ;;  %1184 = vmatprep.subr.bf16.mxu1 %v1959_v61  ;;  %v2035_v59 = vld [vmem:[%s2351_s6 + $0x80] sm:$0xff]   ;;  %v263_v60 = vpack.c.bf16 %v259_v57, %v259_v57  ;;  %v2036_v61 = vld [vmem:[%s2351_s6 + $0x48] sm:$0xff]  }
 0x173   :  { %1103 = vmatpush1.bf16.msra.mxu0 %v1954_v62  ;;  %1185 = vmatpush1.bf16.msra.mxu1 %v1957_v63  ;;  %v2037_v62 = vld [vmem:[%s2351_s6 + $0xc8] sm:$0xff]  }
 0x174   :  { %1104 = vmatprep.subr.bf16.mxu0 %v1962_v0  ;;  %1186 = vmatprep.subr.bf16.mxu1 %v1965_v1  ;;  %v2038_v63 = vld [vmem:[%s2351_s6 + $0x8] sm:$0xff]   ;;  %v2040_v1 = vld [vmem:[%s2351_s6 + $0x50] sm:$0xff]  }
 0x175   :  { %v2039_v0 = vld [vmem:[%s2351_s6 + $0x88] sm:$0xff]  }
 0x177   :  { %1105 = vmatpush1.bf16.msra.mxu0 %v1960_v2  ;;  %1187 = vmatpush1.bf16.msra.mxu1 %v1963_v3  ;;  %v2041_v2 = vld [vmem:[%s2351_s6 + $0xd0] sm:$0xff]  }
 0x178   :  { %1106 = vmatprep.subr.bf16.mxu0 %v1968_v4  ;;  %1188 = vmatprep.subr.bf16.mxu1 %v1971_v5  ;;  %v2042_v3 = vld [vmem:[%s2351_s6 + $0x10] sm:$0xff]   ;;  %v2044_v5 = vld [vmem:[%s2351_s6 + $0x58] sm:$0xff]  }
 0x179   :  { %v2043_v4 = vld [vmem:[%s2351_s6 + $0x90] sm:$0xff]  }
 0x17b   :  { %1107 = vmatpush1.bf16.msra.mxu0 %v1966_v6  ;;  %1189 = vmatpush1.bf16.msra.mxu1 %v1969_v7  ;;  %v2045_v6 = vld [vmem:[%s2351_s6 + $0xd8] sm:$0xff]  }
 0x17c   :  { %1108 = vmatprep.subr.bf16.mxu0 %v1974_v8  ;;  %1190 = vmatprep.subr.bf16.mxu1 %v1977_v9  ;;  %v2046_v7 = vld [vmem:[%s2351_s6 + $0x18] sm:$0xff]   ;;  %v2048_v9 = vld [vmem:[%s2351_s6 + $0x60] sm:$0xff]  }
 0x17d   :  { %v2047_v8 = vld [vmem:[%s2351_s6 + $0x98] sm:$0xff]  }
 0x17f   :  { %1109 = vmatpush1.bf16.msra.mxu0 %v1972_v10  ;;  %1191 = vmatpush1.bf16.msra.mxu1 %v1975_v11  ;;  %v2049_v10 = vld [vmem:[%s2351_s6 + $0xe0] sm:$0xff]  }
 0x180   :  { %1110 = vmatprep.subr.bf16.mxu0 %v1980_v12  ;;  %1192 = vmatprep.subr.bf16.mxu1 %v1983_v13  ;;  %v2050_v11 = vld [vmem:[%s2351_s6 + $0x20] sm:$0xff]   ;;  %v2052_v13 = vld [vmem:[%s2351_s6 + $0x68] sm:$0xff]  }
 0x181   :  { %v2051_v12 = vld [vmem:[%s2351_s6 + $0xa0] sm:$0xff]  }
 0x183   :  { %1111 = vmatpush1.bf16.msra.mxu0 %v1978_v14  ;;  %1193 = vmatpush1.bf16.msra.mxu1 %v1981_v15  ;;  %v2053_v14 = vld [vmem:[%s2351_s6 + $0xe8] sm:$0xff]  }
 0x184   :  { %1112 = vmatprep.subr.bf16.mxu0 %v1986_v16  ;;  %1194 = vmatprep.subr.bf16.mxu1 %v1989_v17  ;;  %v2054_v15 = vld [vmem:[%s2351_s6 + $0x28] sm:$0xff]   ;;  %v2056_v17 = vld [vmem:[%s2351_s6 + $0x70] sm:$0xff]  }
 0x185   :  { %v2055_v16 = vld [vmem:[%s2351_s6 + $0xa8] sm:$0xff]  }
 0x187   :  { %1113 = vmatpush1.bf16.msra.mxu0 %v1984_v18  ;;  %1195 = vmatpush1.bf16.msra.mxu1 %v1987_v19  ;;  %v2057_v18 = vld [vmem:[%s2351_s6 + $0xf0] sm:$0xff]  }
 0x188   :  { %1114 = vmatprep.subr.bf16.mxu0 %v1992_v20  ;;  %1196 = vmatprep.subr.bf16.mxu1 %v1995_v21  ;;  %v2058_v19 = vld [vmem:[%s2351_s6 + $0x30] sm:$0xff]   ;;  %v2060_v21 = vld [vmem:[%s2351_s6 + $0x78] sm:$0xff]  }
 0x189   :  { %v2059_v20 = vld [vmem:[%s2351_s6 + $0xb0] sm:$0xff]  }
 0x18b   :  { %1115 = vmatpush1.bf16.msra.mxu0 %v1990_v22  ;;  %1197 = vmatpush1.bf16.msra.mxu1 %v1993_v23  ;;  %v2061_v22 = vld [vmem:[%s2351_s6 + $0xf8] sm:$0xff]  }
 0x18c   :  { %1116 = vmatprep.subr.bf16.mxu0 %v1998_v24  ;;  %1198 = vmatprep.subr.bf16.mxu1 %v2001_v30  ;;  %v2062_v23 = vld [vmem:[%s2351_s6 + $0x38] sm:$0xff]   ;;  %v393_v30 = vld [vmem:[%s2350_s5] sm:$0xf] }
 0x18d   :  { %v2063_v24 = vld [vmem:[%s2351_s6 + $0xb8] sm:$0xff]  }
 0x18f   :  { %1117 = vmatpush1.bf16.msra.mxu0 %v1996_v31  ;;  %1199 = vmatpush1.bf16.msra.mxu1 %v1999_v32  ;;  %v398_v31 = vrot.slane %v393_v30, %v73_v26  ;;  %v406_v32 = vrot.slane %v393_v30, %v81_v42 }
 0x190   :  { %1118 = vmatprep.subr.bf16.mxu0 %v2004_v33  ;;  %1200 = vmatprep.subr.bf16.mxu1 %v2007_v35  ;;  %v402_v33 = vrot.slane %v393_v30, %v77_v28  ;;  %v410_v35 = vrot.slane %v393_v30, %v85_v29 }
 0x193   :  { %1119 = vmatpush1.bf16.msra.mxu0 %v2002_v36  ;;  %1201 = vmatpush1.bf16.msra.mxu1 %v2005_v37 }
 0x194   :  { %1120 = vmatprep.subr.bf16.mxu0 %v2010_v38  ;;  %1202 = vmatprep.subr.bf16.mxu1 %v2013_v39 }
 0x197   :  { %1121 = vmatpush1.bf16.msra.mxu0 %v2008_v40  ;;  %1203 = vmatpush1.bf16.msra.mxu1 %v2011_v41 }
 0x198   :  { %1122 = vmatprep.subr.bf16.mxu0 %v2016_v43  ;;  %1204 = vmatprep.subr.bf16.mxu1 %v2019_v44 }
 0x19b   :  { %1123 = vmatpush1.bf16.msra.mxu0 %v2014_v45  ;;  %1205 = vmatpush1.bf16.msra.mxu1 %v2017_v46 }
 0x19c   :  { %1124 = vmatprep.subr.bf16.mxu0 %v2022_v48  ;;  %1206 = vmatprep.subr.bf16.mxu1 %v2025_v49 }
 0x19f   :  { %1125 = vmatpush1.bf16.msra.mxu0 %v2020_v50  ;;  %1207 = vmatpush1.bf16.msra.mxu1 %v2023_v51 }
 0x1a0   :  { %1126 = vmatprep.subr.bf16.mxu0 %v2028_v53  ;;  %1208 = vmatprep.subr.bf16.mxu1 %v2031_v54  ;;  %v1722_v54 = vld [vmem:[%s2352_s7] ss:$0 sm:$0xff] }
 0x1a3   :  { %1127 = vmatpush1.bf16.msra.mxu0 %v2026_v55  ;;  %1209 = vmatpush1.bf16.msra.mxu1 %v2029_v56 }
 0x1a4   :  { %1755 = vmatprep.subr.bf16.mxu0 %v2032_v27  ;;  %1777 = vmatprep.subr.bf16.mxu1 %v2033_v58 }
 0x1a6   :  { %1129 = vmatmul.mubr.bf16.vlgmr.msra.gmra.mrb[4].mxu0 %v263_v60  ;;  %1211 = vmatmul.mubr.bf16.vlgmr.msra.gmra.mrb[4].mxu1 %v263_v60 }
 0x1a7   :  { %1756 = vmatpush3.bf16.msra.mxu0 %v2034_v34  ;;  %1778 = vmatpush3.bf16.msra.mxu1 %v2035_v59 }
 0x1a8   :  { %1757 = vmatprep.subr.bf16.mxu0 %v2036_v61  ;;  %1779 = vmatprep.subr.bf16.mxu1 %v2037_v62 }
 0x1ab   :  { %1758 = vmatpush3.bf16.msra.mxu0 %v2038_v63  ;;  %1780 = vmatpush3.bf16.msra.mxu1 %v2039_v0 }
 0x1ac   :  { %1759 = vmatprep.subr.bf16.mxu0 %v2040_v1  ;;  %1781 = vmatprep.subr.bf16.mxu1 %v2041_v2 }
 0x1af   :  { %1760 = vmatpush3.bf16.msra.mxu0 %v2042_v3  ;;  %1782 = vmatpush3.bf16.msra.mxu1 %v2043_v4 }
 0x1b0   :  { %1761 = vmatprep.subr.bf16.mxu0 %v2044_v5  ;;  %1783 = vmatprep.subr.bf16.mxu1 %v2045_v6 }
 0x1b3   :  { %1762 = vmatpush3.bf16.msra.mxu0 %v2046_v7  ;;  %1784 = vmatpush3.bf16.msra.mxu1 %v2047_v8 }
 0x1b4   :  { %1763 = vmatprep.subr.bf16.mxu0 %v2048_v9  ;;  %1785 = vmatprep.subr.bf16.mxu1 %v2049_v10 }
 0x1b7   :  { %1764 = vmatpush3.bf16.msra.mxu0 %v2050_v11  ;;  %1786 = vmatpush3.bf16.msra.mxu1 %v2051_v12 }
 0x1b8   :  { %1765 = vmatprep.subr.bf16.mxu0 %v2052_v13  ;;  %1787 = vmatprep.subr.bf16.mxu1 %v2053_v14 }
 0x1bb   :  { %1766 = vmatpush3.bf16.msra.mxu0 %v2054_v15  ;;  %1788 = vmatpush3.bf16.msra.mxu1 %v2055_v16 }
 0x1bc   :  { %1767 = vmatprep.subr.bf16.mxu0 %v2056_v17  ;;  %1789 = vmatprep.subr.bf16.mxu1 %v2057_v18 }
 0x1bf   :  { %1768 = vmatpush3.bf16.msra.mxu0 %v2058_v19  ;;  %1790 = vmatpush3.bf16.msra.mxu1 %v2059_v20 }
 0x1c0   :  { %1769 = vmatprep.subr.bf16.mxu0 %v2060_v21  ;;  %1791 = vmatprep.subr.bf16.mxu1 %v2061_v22 }
 0x1c3   :  { %1770 = vmatpush3.bf16.msra.mxu0 %v2062_v23  ;;  %1792 = vmatpush3.bf16.msra.mxu1 %v2063_v24 }
 0x279   :  { %v1130_v36 = vpop.f32.mrb[4].mxu0  ;;  %v1212_v37 = vpop.f32.mrb[4].mxu1 }
 0x27a   :  { %v1799_v38 = vadd.f32 %v1130_v36, %v398_v31  ;;  %v1801_v39 = vadd.f32 %v1212_v37, %v406_v32  ;;  %v1132_v40 = vpop.f32.mrb[5].mxu0  ;;  %v1214_v41 = vpop.f32.mrb[5].mxu1 }
 0x27b   :  { %v1800_v43 = vadd.f32 %v1132_v40, %v402_v33  ;;  %v1802_v44 = vadd.f32 %v1214_v41, %v410_v35  ;;  %v1134_v45 = vpop.f32.mrb[6].mxu0  ;;  %v1216_v46 = vpop.f32.mrb[6].mxu1 }
 0x27c   :  { %v1219_v26 = vmax.f32 %v1799_v38, 0.0  ;;  %v1221_v47 = vmax.f32 %v1801_v39, 0.0  ;;  %v1135_v48 = vpop.f32.mrb[7].mxu0  ;;  %v1217_v42 = vpop.f32.mrb[7].mxu1 }
 0x27d   :  { %v1220_v49 = vmax.f32 %v1800_v43, 0.0  ;;  %v1222_v50 = vmax.f32 %v1802_v44, 0.0 }
 0x27e   :  { %v1223_v25 = vpack.c.bf16 %v1219_v26, %v1219_v26  ;;  %v1225_v29 = vpack.c.bf16 %v1221_v47, %v1221_v47 }
 0x27f   :  { %v1224_v28 = vpack.c.bf16 %v1220_v49, %v1220_v49  ;;  %v1226_v51 = vpack.c.bf16 %v1222_v50, %v1222_v50 }
 0x281   :  { %1522 = vmatprep.mubr.bf16.mxu0 %v1224_v28  ;;  %1562 = vmatprep.mubr.bf16.mxu1 %v1226_v51 }
 0x282   :  { %1523 = vmatmul.mubr.bf16.vlgmr.msra.gmra.mrb[8].mxu0 %v1223_v25  ;;  %1563 = vmatmul.mubr.bf16.vlgmr.msra.gmra.mrb[8].mxu1 %v1225_v29 }
 0x355   :  { %v1771_v52 = vpop.f32.mrb[8].mxu0  ;;  %v1793_v53 = vpop.f32.mrb[8].mxu1 }
 0x356   :  { %v1772_v55 = vpop.f32.mrb[9].mxu0  ;;  %v1794_v56 = vpop.f32.mrb[9].mxu1 }
 0x357   :  { %v1773_v57 = vadd.f32 %v1772_v55, %v1771_v52  ;;  %v1795_v27 = vadd.f32 %v1794_v56, %v1793_v53  ;;  %v1774_v58 = vpop.f32.mrb[10].mxu0  ;;  %v1796_v34 = vpop.f32.mrb[10].mxu1 }
 0x358   :  { %v1775_v59 = vpop.f32.mrb[11].mxu0  ;;  %v1797_v60 = vpop.f32.mrb[11].mxu1 }
 0x359   :  { %v1525_v61 = vadd.f32 %v1773_v57, %v1722_v54 }
 0x35b   :  { %v1565_v62 = vadd.f32 %v1795_v27, %v1525_v61 }
 0x35d   :  { %1570 = vst.msk [vmem:[%s2353_s8] sm:$0xff] %vm50_vm0, %v1565_v62 }
 0x35e   :  { %1575 = vsyncpa [#allocation3], 1 }

</bundles_post_ra>
